<compile_context>
chip_gen: v7x
topology: tpu7x:2x2x1
jax: 0.10.0
libtpu: 0.0.40
codegen_flags: <defaults>
</compile_context>

<pallas_src>
import math
import jax
import jax.numpy as jnp
from jax.experimental import pallas as pl
from jax.experimental.pallas import tpu as pltpu  # noqa: F401  (not needed at this size)

# ----- model config (MambaBlock(d_model=16, d_conv=4, d_state=2, expand=2)) -----
D_MODEL = 16
D_CONV = 4
D_STATE = 2
EXPAND = 2
D_INNER = EXPAND * D_MODEL                    # 32
DT_RANK = math.ceil(D_MODEL / 16)             # 1
SEQ = 8
BATCH = 2
EPS = 1e-5


def _softplus(x):
    # matches torch.nn.functional.softplus (threshold=20)
    return jnp.where(x > 20.0, x, jnp.log1p(jnp.exp(jnp.minimum(x, 20.0))))


def _silu(x):
    return x * (1.0 / (1.0 + jnp.exp(-x)))


def _layernorm(x, w, b):
    mu = jnp.mean(x, axis=-1, keepdims=True)
    var = jnp.mean((x - mu) ** 2, axis=-1, keepdims=True)
    return (x - mu) * jax.lax.rsqrt(var + EPS) * w + b


def mamba_block_kernel(x_ref, vec_ref, m16_ref, m32_ref, o_ref):
    B, L, D = x_ref.shape
    BL = B * L
    DI, DS, DC = D_INNER, D_STATE, D_CONV
    SW = DS * DI                                  # replicated "state*inner" lane width = 64

    # ---------- unpack parameter slabs (static sub-views of 3 DMA'd arrays) ----------
    ln1_w = vec_ref[0:1, 0:D]
    ln1_b = vec_ref[1:2, 0:D]
    conv_b = vec_ref[2:3, 0:DI]
    dt_bias_rep = vec_ref[3:4, 0:SW]              # dt bias tiled over d_state
    neg_a_rep = vec_ref[4:5, 0:SW]                # -exp(A_log)^T flattened to (1, 64)
    d_vec = vec_ref[5:6, 0:DI]
    ln2_w = vec_ref[6:7, 0:D]
    ln2_b = vec_ref[7:8, 0:D]
    conv_w = vec_ref[8:8 + DC, 0:DI]              # (d_conv, d_inner), sublane-aligned rows
    ffn_b1 = vec_ref[12:13, 0:D]
    ffn_b2 = vec_ref[13:14, 0:D]

    w_in = m16_ref[:, 0:2 * DI]                   # (16, 64)  in_proj (x|z halves)
    ffn_w1 = m16_ref[:, 2 * DI:2 * DI + D]        # (16, 16)
    ffn_w2 = m16_ref[:, 2 * DI + D:2 * DI + 2 * D]  # (16, 16)

    w_dbc = m32_ref[:, 0:3 * SW]                  # (32, 192)  [delta_rep | B_rep | C_rep]
    w_out = m32_ref[:, 3 * SW:3 * SW + D]         # (32, 16)

    x = x_ref[...]
    xf = x.reshape(BL, D)                         # fold batch into rows (M = B*L)

    # ---------------- x = x + Mamba(ln1(x)) ----------------
    xn = _layernorm(xf, ln1_w, ln1_b)

    # fused in_proj (bias-free): one matmul, split x / z by static lane slice
    xz = jnp.dot(xn, w_in, preferred_element_type=jnp.float32)     # (BL, 64)
    xm = xz[:, 0:DI]
    z = xz[:, DI:2 * DI]

    # causal depthwise conv1d (groups=d_inner, left pad d_conv-1, truncate to L),
    # fully register-resident: padded concat + static sublane-window slices.
    xm3 = xm.reshape(B, L, DI)
    xpad = jnp.concatenate(
        [jnp.zeros((B, DC - 1, DI), jnp.float32), xm3], axis=1)    # (B, L+3, DI)
    acc = xpad[:, 0:L, :] * conv_w[0:1, :]
    for k in range(1, DC):
        acc = acc + xpad[:, k:k + L, :] * conv_w[k:k + 1, :]
    u = _silu(acc + conv_b).reshape(BL, DI)                        # SSM input

    # fused x_proj / dt_proj (both bias-free, folded + replicated offline):
    #   cols [0:64)   -> delta pre-activation, already tiled over d_state
    #   cols [64:128) -> B replicated over d_inner   (lane j = s*DI + i)
    #   cols [128:192)-> C replicated over d_inner
    dbc = jnp.dot(u, w_dbc, preferred_element_type=jnp.float32)    # (BL, 192)
    delta_rep = _softplus(dbc[:, 0:SW] + dt_bias_rep)              # (BL, 64)
    b_rep = dbc[:, SW:2 * SW]                                      # (BL, 64)
    c_rep = dbc[:, 2 * SW:3 * SW]                                  # (BL, 64)

    dA = jnp.exp(delta_rep * neg_a_rep)                            # (BL, 64)
    du = delta_rep[:, 0:DI] * u                                    # (BL, 32)
    dBu = jnp.concatenate([du, du], axis=1) * b_rep                # (BL, 64)

    # fold batch into lanes: (BL, 64) -> (L, B*d_state*d_inner) = (8, 128)
    def to_lanes(a):
        return jnp.concatenate([a[b * L:(b + 1) * L, :] for b in range(B)], axis=1)

    dA_f = to_lanes(dA)
    dBu_f = to_lanes(dBu)
    c_f = to_lanes(c_rep)

    # selective scan: one full-lane-row FMA per step, state kept in registers
    h = jnp.zeros((1, B * SW), jnp.float32)
    hs = []
    for t in range(L):            # L=8: full unroll is optimal; use fori_loop if L grows
        h = dA_f[t:t + 1, :] * h + dBu_f[t:t + 1, :]
        hs.append(h)
    h_all = jnp.concatenate(hs, axis=0)                            # (L, 128)

    # vectorized C contraction (sum over d_state) + unfold batch back to rows
    prod = h_all * c_f                                             # (L, 128)
    y_parts = []
    for b in range(B):
        blk = prod[:, b * SW:(b + 1) * SW]                         # (L, 64)
        yb = blk[:, 0:DI]
        for s in range(1, DS):
            yb = yb + blk[:, s * DI:(s + 1) * DI]
        y_parts.append(yb)
    y = jnp.concatenate(y_parts, axis=0)                           # (BL, 32)

    y = y + u * d_vec                                              # skip term D * u
    y = y * _silu(z)                                               # gate
    sa = jnp.dot(y, w_out, preferred_element_type=jnp.float32)     # out_proj
    x1 = xf + sa

    # ---------------- x = x + ffn(ln2(x)) ----------------
    xn2 = _layernorm(x1, ln2_w, ln2_b)
    h1 = jnp.maximum(
        jnp.dot(xn2, ffn_w1, preferred_element_type=jnp.float32) + ffn_b1, 0.0)
    h2 = jnp.dot(h1, ffn_w2, preferred_element_type=jnp.float32) + ffn_b2
    # nn.Dropout(0.15) is identity in eval mode
    o_ref[...] = (x1 + h2).reshape(B, L, D)


def pack_params(p):
    """Offline (wrapper-side) weight refactoring + packing into 3 DMA slabs.

    Mathematically exact: dt_proj folded into x_proj (both bias-free), B/C
    projection columns replicated over d_inner, delta column block + dt bias
    tiled over d_state, A = -exp(A_log) flattened, all tiny vectors stacked.
    """
    w_delta_t = jnp.dot(p["w_xproj_t"][:, :DT_RANK], p["w_dt_t"])            # (32, 32)
    w_delta_rep = jnp.tile(w_delta_t, (1, D_STATE))                          # (32, 64)
    w_b_rep = jnp.repeat(p["w_xproj_t"][:, DT_RANK:DT_RANK + D_STATE],
                         D_INNER, axis=1)                                    # (32, 64)
    w_c_rep = jnp.repeat(p["w_xproj_t"][:, DT_RANK + D_STATE:DT_RANK + 2 * D_STATE],
                         D_INNER, axis=1)                                    # (32, 64)
    w_dbc = jnp.concatenate([w_delta_rep, w_b_rep, w_c_rep], axis=1)         # (32, 192)
    neg_a_rep = (-jnp.exp(p["a_log_t"])).reshape(1, D_STATE * D_INNER)       # (1, 64)
    dt_bias_rep = jnp.tile(p["dt_bias"], (1, D_STATE))                       # (1, 64)

    def row(v):
        v = jnp.asarray(v, jnp.float32).reshape(1, -1)
        return jnp.pad(v, ((0, 0), (0, 128 - v.shape[1])))

    vec_rows = [
        row(p["ln1_w"]), row(p["ln1_b"]),          # 0, 1
        row(p["conv_b"]), row(dt_bias_rep),        # 2, 3
        row(neg_a_rep), row(p["d"]),               # 4, 5
        row(p["ln2_w"]), row(p["ln2_b"]),          # 6, 7
    ] + [row(p["conv_w"][k]) for k in range(D_CONV)] + [   # 8..11 (sublane-aligned)
        row(p["ffn_b1"]), row(p["ffn_b2"]),        # 12, 13
    ]
    slab_v = jnp.concatenate(vec_rows, axis=0)                               # (14, 128)
    slab_m16 = jnp.concatenate([p["w_in_t"], p["ffn_w1_t"], p["ffn_w2_t"]],
                               axis=1)                                       # (16, 96)
    slab_m32 = jnp.concatenate([w_dbc, p["w_out_t"]], axis=1)                # (32, 208)
    return slab_v, slab_m16, slab_m32


def mamba_block(x, slab_v, slab_m16, slab_m32):
    B, L, D = x.shape
    # Single gridless invocation: 4 input DMAs, everything (< 100 KiB) lives in
    # VMEM for the whole call; no scratch, no pipelining needed.
    return pl.pallas_call(
        mamba_block_kernel,
        out_shape=jax.ShapeDtypeStruct((B, L, D), jnp.float32),
    )(x, slab_v, slab_m16, slab_m32)


def init_params(key):
    ks = jax.random.split(key, 11)

    def nrm(k, shape, scale=0.1):
        return (scale * jax.random.normal(k, shape)).astype(jnp.float32)

    p = {}
    p["ln1_w"] = jnp.ones((1, D_MODEL), jnp.float32)
    p["ln1_b"] = jnp.zeros((1, D_MODEL), jnp.float32)
    # Mamba.in_proj.weight (2*d_inner, d_model) stored transposed
    p["w_in_t"] = nrm(ks[0], (D_MODEL, 2 * D_INNER))
    # Mamba.conv1d.weight (d_inner, 1, d_conv) stored as (d_conv, d_inner)
    p["conv_w"] = nrm(ks[1], (D_CONV, D_INNER))
    p["conv_b"] = nrm(ks[2], (1, D_INNER))
    # Mamba.x_proj.weight (dt_rank + 2*d_state, d_inner) stored transposed, cols = dt|B|C
    p["w_xproj_t"] = nrm(ks[3], (D_INNER, DT_RANK + 2 * D_STATE))
    # Mamba.dt_proj
    p["w_dt_t"] = nrm(ks[4], (DT_RANK, D_INNER))
    p["dt_bias"] = nrm(ks[5], (1, D_INNER))
    # A_log init = log(1..d_state) replicated over d_inner (stored transposed)
    a = jnp.tile(jnp.arange(1, D_STATE + 1, dtype=jnp.float32)[:, None], (1, D_INNER))
    p["a_log_t"] = jnp.log(a)                              # (d_state, d_inner)
    p["d"] = jnp.ones((1, D_INNER), jnp.float32)           # Mamba.D init = ones
    p["w_out_t"] = nrm(ks[6], (D_INNER, D_MODEL))
    p["ln2_w"] = jnp.ones((1, D_MODEL), jnp.float32)
    p["ln2_b"] = jnp.zeros((1, D_MODEL), jnp.float32)
    p["ffn_w1_t"] = nrm(ks[7], (D_MODEL, D_MODEL))
    p["ffn_b1"] = nrm(ks[8], (1, D_MODEL))
    p["ffn_w2_t"] = nrm(ks[9], (D_MODEL, D_MODEL))
    p["ffn_b2"] = nrm(ks[10], (1, D_MODEL))
    return p


if __name__ == "__main__":
    key = jax.random.PRNGKey(0)
    kx, kp = jax.random.split(key)
    x = jax.random.normal(kx, (BATCH, SEQ, D_MODEL), dtype=jnp.float32)  # B N C
    params = init_params(kp)
    packed = pack_params(params)     # one-time weight refactor + packing (host/XLA side)

    out = mamba_block(x, *packed)
    out = jax.block_until_ready(out)

    assert out.shape == (BATCH, SEQ, D_MODEL)
    assert bool(jnp.all(jnp.isfinite(out)))
    print("KERNEL_OK")
</pallas_src>

<mosaic_0001>
module attributes {stable_mosaic.version = 11 : i64} {
  func.func @mamba_block_kernel(%arg0: memref<2x8x16xf32, #tpu.memory_space<vmem>>, %arg1: memref<14x128xf32, #tpu.memory_space<vmem>>, %arg2: memref<16x96xf32, #tpu.memory_space<vmem>>, %arg3: memref<32x208xf32, #tpu.memory_space<vmem>>, %arg4: memref<2x8x16xf32, #tpu.memory_space<vmem>>) attributes {dimension_semantics = [], scalar_prefetch = 0 : i64, scratch_operands = 0 : i64, tpu.core_type = #tpu.core_type<tc>} {
    %c0 = arith.constant 0 : index
    %c0_0 = arith.constant 0 : index
    %0 = vector.load %arg1[%c0, %c0_0] : memref<14x128xf32, #tpu.memory_space<vmem>>, vector<1x16xf32>
    %c1 = arith.constant 1 : index
    %c0_1 = arith.constant 0 : index
    %1 = vector.load %arg1[%c1, %c0_1] : memref<14x128xf32, #tpu.memory_space<vmem>>, vector<1x16xf32>
    %c2 = arith.constant 2 : index
    %c0_2 = arith.constant 0 : index
    %2 = vector.load %arg1[%c2, %c0_2] : memref<14x128xf32, #tpu.memory_space<vmem>>, vector<1x32xf32>
    %c3 = arith.constant 3 : index
    %c0_3 = arith.constant 0 : index
    %3 = vector.load %arg1[%c3, %c0_3] : memref<14x128xf32, #tpu.memory_space<vmem>>, vector<1x64xf32>
    %c4 = arith.constant 4 : index
    %c0_4 = arith.constant 0 : index
    %4 = vector.load %arg1[%c4, %c0_4] : memref<14x128xf32, #tpu.memory_space<vmem>>, vector<1x64xf32>
    %c5 = arith.constant 5 : index
    %c0_5 = arith.constant 0 : index
    %5 = vector.load %arg1[%c5, %c0_5] : memref<14x128xf32, #tpu.memory_space<vmem>>, vector<1x32xf32>
    %c6 = arith.constant 6 : index
    %c0_6 = arith.constant 0 : index
    %6 = vector.load %arg1[%c6, %c0_6] : memref<14x128xf32, #tpu.memory_space<vmem>>, vector<1x16xf32>
    %c7 = arith.constant 7 : index
    %c0_7 = arith.constant 0 : index
    %7 = vector.load %arg1[%c7, %c0_7] : memref<14x128xf32, #tpu.memory_space<vmem>>, vector<1x16xf32>
    %c8 = arith.constant 8 : index
    %c0_8 = arith.constant 0 : index
    %8 = vector.load %arg1[%c8, %c0_8] : memref<14x128xf32, #tpu.memory_space<vmem>>, vector<4x32xf32>
    %c12 = arith.constant 12 : index
    %c0_9 = arith.constant 0 : index
    %9 = vector.load %arg1[%c12, %c0_9] : memref<14x128xf32, #tpu.memory_space<vmem>>, vector<1x16xf32>
    %c13 = arith.constant 13 : index
    %c0_10 = arith.constant 0 : index
    %10 = vector.load %arg1[%c13, %c0_10] : memref<14x128xf32, #tpu.memory_space<vmem>>, vector<1x16xf32>
    %c0_11 = arith.constant 0 : index
    %c0_12 = arith.constant 0 : index
    %11 = vector.load %arg2[%c0_11, %c0_12] : memref<16x96xf32, #tpu.memory_space<vmem>>, vector<16x64xf32>
    %c0_13 = arith.constant 0 : index
    %c64 = arith.constant 64 : index
    %12 = vector.load %arg2[%c0_13, %c64] : memref<16x96xf32, #tpu.memory_space<vmem>>, vector<16x16xf32>
    %c0_14 = arith.constant 0 : index
    %c80 = arith.constant 80 : index
    %13 = vector.load %arg2[%c0_14, %c80] : memref<16x96xf32, #tpu.memory_space<vmem>>, vector<16x16xf32>
    %c0_15 = arith.constant 0 : index
    %c0_16 = arith.constant 0 : index
    %14 = vector.load %arg3[%c0_15, %c0_16] : memref<32x208xf32, #tpu.memory_space<vmem>>, vector<32x192xf32>
    %c0_17 = arith.constant 0 : index
    %c192 = arith.constant 192 : index
    %15 = vector.load %arg3[%c0_17, %c192] : memref<32x208xf32, #tpu.memory_space<vmem>>, vector<32x16xf32>
    %c0_18 = arith.constant 0 : index
    %c0_19 = arith.constant 0 : index
    %c0_20 = arith.constant 0 : index
    %16 = vector.load %arg0[%c0_18, %c0_19, %c0_20] : memref<2x8x16xf32, #tpu.memory_space<vmem>>, vector<2x8x16xf32>
    %17 = vector.shape_cast %16 : vector<2x8x16xf32> to vector<16x16xf32>
    %cst = arith.constant dense<0.000000e+00> : vector<16xf32>
    %18 = vector.multi_reduction <add>, %17, %cst [1] : vector<16x16xf32> to vector<16xf32>
    %19 = vector.shape_cast %18 : vector<16xf32> to vector<16x1xf32>
    %cst_21 = arith.constant 1.600000e+01 : f32
    %20 = vector.broadcast %cst_21 : f32 to vector<16x1xf32>
    %21 = arith.divf %19, %20 : vector<16x1xf32>
    %22 = vector.broadcast %21 : vector<16x1xf32> to vector<16x16xf32>
    %23 = arith.subf %17, %22 : vector<16x16xf32>
    %24 = arith.mulf %23, %23 : vector<16x16xf32>
    %cst_22 = arith.constant dense<0.000000e+00> : vector<16xf32>
    %25 = vector.multi_reduction <add>, %24, %cst_22 [1] : vector<16x16xf32> to vector<16xf32>
    %26 = vector.shape_cast %25 : vector<16xf32> to vector<16x1xf32>
    %cst_23 = arith.constant 1.600000e+01 : f32
    %27 = vector.broadcast %cst_23 : f32 to vector<16x1xf32>
    %28 = arith.divf %26, %27 : vector<16x1xf32>
    %29 = vector.broadcast %21 : vector<16x1xf32> to vector<16x16xf32>
    %30 = arith.subf %17, %29 : vector<16x16xf32>
    %cst_24 = arith.constant 9.99999974E-6 : f32
    %31 = vector.broadcast %cst_24 : f32 to vector<16x1xf32>
    %32 = arith.addf %28, %31 : vector<16x1xf32>
    %33 = math.rsqrt %32 : vector<16x1xf32>
    %34 = vector.broadcast %33 : vector<16x1xf32> to vector<16x16xf32>
    %35 = arith.mulf %30, %34 : vector<16x16xf32>
    %36 = vector.broadcast %0 : vector<1x16xf32> to vector<16x16xf32>
    %37 = arith.mulf %35, %36 : vector<16x16xf32>
    %38 = vector.broadcast %1 : vector<1x16xf32> to vector<16x16xf32>
    %39 = arith.addf %37, %38 : vector<16x16xf32>
    %cst_25 = arith.constant dense<0.000000e+00> : vector<16x64xf32>
    %40 = tpu.matmul %39, %11, %cst_25 {dimension_numbers = #tpu.dot_dimension_numbers<[1], [0], [0], [1], [0, 0, 1, 1], [], []>} : vector<16x16xf32>, vector<16x64xf32>, vector<16x64xf32> -> vector<16x64xf32>
    %41 = vector.extract_strided_slice %40 {offsets = [0, 0], sizes = [16, 32], strides = [1, 1]} : vector<16x64xf32> to vector<16x32xf32>
    %42 = vector.extract_strided_slice %40 {offsets = [0, 32], sizes = [16, 32], strides = [1, 1]} : vector<16x64xf32> to vector<16x32xf32>
    %43 = vector.shape_cast %41 : vector<16x32xf32> to vector<2x8x32xf32>
    %cst_26 = arith.constant 0.000000e+00 : f32
    %44 = vector.broadcast %cst_26 : f32 to vector<2x3x32xf32>
    %45 = tpu.concatenate %44, %43 in 1 : vector<2x3x32xf32>, vector<2x8x32xf32> -> vector<2x11x32xf32>
    %46 = vector.extract_strided_slice %45 {offsets = [0, 0, 0], sizes = [2, 8, 32], strides = [1, 1, 1]} : vector<2x11x32xf32> to vector<2x8x32xf32>
    %47 = vector.extract_strided_slice %8 {offsets = [0, 0], sizes = [1, 32], strides = [1, 1]} : vector<4x32xf32> to vector<1x32xf32>
    %48 = vector.shape_cast %47 : vector<1x32xf32> to vector<1x1x32xf32>
    %49 = vector.broadcast %48 : vector<1x1x32xf32> to vector<2x8x32xf32>
    %50 = arith.mulf %46, %49 : vector<2x8x32xf32>
    %51 = vector.extract_strided_slice %45 {offsets = [0, 1, 0], sizes = [2, 8, 32], strides = [1, 1, 1]} : vector<2x11x32xf32> to vector<2x8x32xf32>
    %52 = vector.extract_strided_slice %8 {offsets = [1, 0], sizes = [1, 32], strides = [1, 1]} : vector<4x32xf32> to vector<1x32xf32>
    %53 = vector.shape_cast %52 : vector<1x32xf32> to vector<1x1x32xf32>
    %54 = vector.broadcast %53 : vector<1x1x32xf32> to vector<2x8x32xf32>
    %55 = arith.mulf %51, %54 : vector<2x8x32xf32>
    %56 = arith.addf %50, %55 : vector<2x8x32xf32>
    %57 = vector.extract_strided_slice %45 {offsets = [0, 2, 0], sizes = [2, 8, 32], strides = [1, 1, 1]} : vector<2x11x32xf32> to vector<2x8x32xf32>
    %58 = vector.extract_strided_slice %8 {offsets = [2, 0], sizes = [1, 32], strides = [1, 1]} : vector<4x32xf32> to vector<1x32xf32>
    %59 = vector.shape_cast %58 : vector<1x32xf32> to vector<1x1x32xf32>
    %60 = vector.broadcast %59 : vector<1x1x32xf32> to vector<2x8x32xf32>
    %61 = arith.mulf %57, %60 : vector<2x8x32xf32>
    %62 = arith.addf %56, %61 : vector<2x8x32xf32>
    %63 = vector.extract_strided_slice %45 {offsets = [0, 3, 0], sizes = [2, 8, 32], strides = [1, 1, 1]} : vector<2x11x32xf32> to vector<2x8x32xf32>
    %64 = vector.extract_strided_slice %8 {offsets = [3, 0], sizes = [1, 32], strides = [1, 1]} : vector<4x32xf32> to vector<1x32xf32>
    %65 = vector.shape_cast %64 : vector<1x32xf32> to vector<1x1x32xf32>
    %66 = vector.broadcast %65 : vector<1x1x32xf32> to vector<2x8x32xf32>
    %67 = arith.mulf %63, %66 : vector<2x8x32xf32>
    %68 = arith.addf %62, %67 : vector<2x8x32xf32>
    %69 = vector.shape_cast %2 : vector<1x32xf32> to vector<1x1x32xf32>
    %70 = vector.broadcast %69 : vector<1x1x32xf32> to vector<2x8x32xf32>
    %71 = arith.addf %68, %70 : vector<2x8x32xf32>
    %cst_27 = arith.constant 0.000000e+00 : f32
    %72 = vector.broadcast %cst_27 : f32 to vector<2x8x32xf32>
    %73 = arith.subf %72, %71 : vector<2x8x32xf32>
    %74 = math.exp %73 : vector<2x8x32xf32>
    %cst_28 = arith.constant 1.000000e+00 : f32
    %75 = vector.broadcast %cst_28 : f32 to vector<2x8x32xf32>
    %76 = arith.addf %75, %74 : vector<2x8x32xf32>
    %cst_29 = arith.constant 1.000000e+00 : f32
    %77 = vector.broadcast %cst_29 : f32 to vector<2x8x32xf32>
    %78 = arith.divf %77, %76 : vector<2x8x32xf32>
    %79 = arith.mulf %71, %78 : vector<2x8x32xf32>
    %80 = vector.shape_cast %79 : vector<2x8x32xf32> to vector<16x32xf32>
    %cst_30 = arith.constant dense<0.000000e+00> : vector<16x192xf32>
    %81 = tpu.matmul %80, %14, %cst_30 {dimension_numbers = #tpu.dot_dimension_numbers<[1], [0], [0], [1], [0, 0, 1, 1], [], []>} : vector<16x32xf32>, vector<32x192xf32>, vector<16x192xf32> -> vector<16x192xf32>
    %82 = vector.extract_strided_slice %81 {offsets = [0, 0], sizes = [16, 64], strides = [1, 1]} : vector<16x192xf32> to vector<16x64xf32>
    %83 = vector.broadcast %3 : vector<1x64xf32> to vector<16x64xf32>
    %84 = arith.addf %82, %83 : vector<16x64xf32>
    %cst_31 = arith.constant 2.000000e+01 : f32
    %85 = vector.broadcast %cst_31 : f32 to vector<16x64xf32>
    %86 = arith.cmpf ogt, %84, %85 : vector<16x64xf32>
    %cst_32 = arith.constant 2.000000e+01 : f32
    %87 = vector.broadcast %cst_32 : f32 to vector<16x64xf32>
    %88 = arith.minimumf %84, %87 : vector<16x64xf32>
    %89 = math.exp %88 : vector<16x64xf32>
    %90 = math.log1p %89 : vector<16x64xf32>
    %91 = arith.select %86, %84, %90 : vector<16x64xi1>, vector<16x64xf32>
    %92 = vector.extract_strided_slice %81 {offsets = [0, 64], sizes = [16, 64], strides = [1, 1]} : vector<16x192xf32> to vector<16x64xf32>
    %93 = vector.extract_strided_slice %81 {offsets = [0, 128], sizes = [16, 64], strides = [1, 1]} : vector<16x192xf32> to vector<16x64xf32>
    %94 = vector.broadcast %4 : vector<1x64xf32> to vector<16x64xf32>
    %95 = arith.mulf %91, %94 : vector<16x64xf32>
    %96 = math.exp %95 : vector<16x64xf32>
    %97 = vector.extract_strided_slice %91 {offsets = [0, 0], sizes = [16, 32], strides = [1, 1]} : vector<16x64xf32> to vector<16x32xf32>
    %98 = arith.mulf %97, %80 : vector<16x32xf32>
    %99 = tpu.concatenate %98, %98 in 1 : vector<16x32xf32>, vector<16x32xf32> -> vector<16x64xf32>
    %100 = arith.mulf %99, %92 : vector<16x64xf32>
    %101 = vector.extract_strided_slice %96 {offsets = [0, 0], sizes = [8, 64], strides = [1, 1]} : vector<16x64xf32> to vector<8x64xf32>
    %102 = vector.extract_strided_slice %96 {offsets = [8, 0], sizes = [8, 64], strides = [1, 1]} : vector<16x64xf32> to vector<8x64xf32>
    %103 = tpu.concatenate %101, %102 in 1 : vector<8x64xf32>, vector<8x64xf32> -> vector<8x128xf32>
    %104 = vector.extract_strided_slice %100 {offsets = [0, 0], sizes = [8, 64], strides = [1, 1]} : vector<16x64xf32> to vector<8x64xf32>
    %105 = vector.extract_strided_slice %100 {offsets = [8, 0], sizes = [8, 64], strides = [1, 1]} : vector<16x64xf32> to vector<8x64xf32>
    %106 = tpu.concatenate %104, %105 in 1 : vector<8x64xf32>, vector<8x64xf32> -> vector<8x128xf32>
    %107 = vector.extract_strided_slice %93 {offsets = [0, 0], sizes = [8, 64], strides = [1, 1]} : vector<16x64xf32> to vector<8x64xf32>
    %108 = vector.extract_strided_slice %93 {offsets = [8, 0], sizes = [8, 64], strides = [1, 1]} : vector<16x64xf32> to vector<8x64xf32>
    %109 = tpu.concatenate %107, %108 in 1 : vector<8x64xf32>, vector<8x64xf32> -> vector<8x128xf32>
    %cst_33 = arith.constant 0.000000e+00 : f32
    %110 = vector.broadcast %cst_33 : f32 to vector<1x128xf32>
    %111 = vector.extract_strided_slice %103 {offsets = [0, 0], sizes = [1, 128], strides = [1, 1]} : vector<8x128xf32> to vector<1x128xf32>
    %112 = arith.mulf %111, %110 : vector<1x128xf32>
    %113 = vector.extract_strided_slice %106 {offsets = [0, 0], sizes = [1, 128], strides = [1, 1]} : vector<8x128xf32> to vector<1x128xf32>
    %114 = arith.addf %112, %113 : vector<1x128xf32>
    %115 = vector.extract_strided_slice %103 {offsets = [1, 0], sizes = [1, 128], strides = [1, 1]} : vector<8x128xf32> to vector<1x128xf32>
    %116 = arith.mulf %115, %114 : vector<1x128xf32>
    %117 = vector.extract_strided_slice %106 {offsets = [1, 0], sizes = [1, 128], strides = [1, 1]} : vector<8x128xf32> to vector<1x128xf32>
    %118 = arith.addf %116, %117 : vector<1x128xf32>
    %119 = vector.extract_strided_slice %103 {offsets = [2, 0], sizes = [1, 128], strides = [1, 1]} : vector<8x128xf32> to vector<1x128xf32>
    %120 = arith.mulf %119, %118 : vector<1x128xf32>
    %121 = vector.extract_strided_slice %106 {offsets = [2, 0], sizes = [1, 128], strides = [1, 1]} : vector<8x128xf32> to vector<1x128xf32>
    %122 = arith.addf %120, %121 : vector<1x128xf32>
    %123 = vector.extract_strided_slice %103 {offsets = [3, 0], sizes = [1, 128], strides = [1, 1]} : vector<8x128xf32> to vector<1x128xf32>
    %124 = arith.mulf %123, %122 : vector<1x128xf32>
    %125 = vector.extract_strided_slice %106 {offsets = [3, 0], sizes = [1, 128], strides = [1, 1]} : vector<8x128xf32> to vector<1x128xf32>
    %126 = arith.addf %124, %125 : vector<1x128xf32>
    %127 = vector.extract_strided_slice %103 {offsets = [4, 0], sizes = [1, 128], strides = [1, 1]} : vector<8x128xf32> to vector<1x128xf32>
    %128 = arith.mulf %127, %126 : vector<1x128xf32>
    %129 = vector.extract_strided_slice %106 {offsets = [4, 0], sizes = [1, 128], strides = [1, 1]} : vector<8x128xf32> to vector<1x128xf32>
    %130 = arith.addf %128, %129 : vector<1x128xf32>
    %131 = vector.extract_strided_slice %103 {offsets = [5, 0], sizes = [1, 128], strides = [1, 1]} : vector<8x128xf32> to vector<1x128xf32>
    %132 = arith.mulf %131, %130 : vector<1x128xf32>
    %133 = vector.extract_strided_slice %106 {offsets = [5, 0], sizes = [1, 128], strides = [1, 1]} : vector<8x128xf32> to vector<1x128xf32>
    %134 = arith.addf %132, %133 : vector<1x128xf32>
    %135 = vector.extract_strided_slice %103 {offsets = [6, 0], sizes = [1, 128], strides = [1, 1]} : vector<8x128xf32> to vector<1x128xf32>
    %136 = arith.mulf %135, %134 : vector<1x128xf32>
    %137 = vector.extract_strided_slice %106 {offsets = [6, 0], sizes = [1, 128], strides = [1, 1]} : vector<8x128xf32> to vector<1x128xf32>
    %138 = arith.addf %136, %137 : vector<1x128xf32>
    %139 = vector.extract_strided_slice %103 {offsets = [7, 0], sizes = [1, 128], strides = [1, 1]} : vector<8x128xf32> to vector<1x128xf32>
    %140 = arith.mulf %139, %138 : vector<1x128xf32>
    %141 = vector.extract_strided_slice %106 {offsets = [7, 0], sizes = [1, 128], strides = [1, 1]} : vector<8x128xf32> to vector<1x128xf32>
    %142 = arith.addf %140, %141 : vector<1x128xf32>
    %143 = tpu.concatenate %114, %118, %122, %126, %130, %134, %138, %142 in 0 : vector<1x128xf32>, vector<1x128xf32>, vector<1x128xf32>, vector<1x128xf32>, vector<1x128xf32>, vector<1x128xf32>, vector<1x128xf32>, vector<1x128xf32> -> vector<8x128xf32>
    %144 = arith.mulf %143, %109 : vector<8x128xf32>
    %145 = vector.extract_strided_slice %144 {offsets = [0, 0], sizes = [8, 64], strides = [1, 1]} : vector<8x128xf32> to vector<8x64xf32>
    %146 = vector.extract_strided_slice %145 {offsets = [0, 0], sizes = [8, 32], strides = [1, 1]} : vector<8x64xf32> to vector<8x32xf32>
    %147 = vector.extract_strided_slice %145 {offsets = [0, 32], sizes = [8, 32], strides = [1, 1]} : vector<8x64xf32> to vector<8x32xf32>
    %148 = arith.addf %146, %147 : vector<8x32xf32>
    %149 = vector.extract_strided_slice %144 {offsets = [0, 64], sizes = [8, 64], strides = [1, 1]} : vector<8x128xf32> to vector<8x64xf32>
    %150 = vector.extract_strided_slice %149 {offsets = [0, 0], sizes = [8, 32], strides = [1, 1]} : vector<8x64xf32> to vector<8x32xf32>
    %151 = vector.extract_strided_slice %149 {offsets = [0, 32], sizes = [8, 32], strides = [1, 1]} : vector<8x64xf32> to vector<8x32xf32>
    %152 = arith.addf %150, %151 : vector<8x32xf32>
    %153 = tpu.concatenate %148, %152 in 0 : vector<8x32xf32>, vector<8x32xf32> -> vector<16x32xf32>
    %154 = vector.broadcast %5 : vector<1x32xf32> to vector<16x32xf32>
    %155 = arith.mulf %80, %154 : vector<16x32xf32>
    %156 = arith.addf %153, %155 : vector<16x32xf32>
    %cst_34 = arith.constant 0.000000e+00 : f32
    %157 = vector.broadcast %cst_34 : f32 to vector<16x32xf32>
    %158 = arith.subf %157, %42 : vector<16x32xf32>
    %159 = math.exp %158 : vector<16x32xf32>
    %cst_35 = arith.constant 1.000000e+00 : f32
    %160 = vector.broadcast %cst_35 : f32 to vector<16x32xf32>
    %161 = arith.addf %160, %159 : vector<16x32xf32>
    %cst_36 = arith.constant 1.000000e+00 : f32
    %162 = vector.broadcast %cst_36 : f32 to vector<16x32xf32>
    %163 = arith.divf %162, %161 : vector<16x32xf32>
    %164 = arith.mulf %42, %163 : vector<16x32xf32>
    %165 = arith.mulf %156, %164 : vector<16x32xf32>
    %cst_37 = arith.constant dense<0.000000e+00> : vector<16x16xf32>
    %166 = tpu.matmul %165, %15, %cst_37 {dimension_numbers = #tpu.dot_dimension_numbers<[1], [0], [0], [1], [0, 0, 1, 1], [], []>} : vector<16x32xf32>, vector<32x16xf32>, vector<16x16xf32> -> vector<16x16xf32>
    %167 = arith.addf %17, %166 : vector<16x16xf32>
    %cst_38 = arith.constant dense<0.000000e+00> : vector<16xf32>
    %168 = vector.multi_reduction <add>, %167, %cst_38 [1] : vector<16x16xf32> to vector<16xf32>
    %169 = vector.shape_cast %168 : vector<16xf32> to vector<16x1xf32>
    %cst_39 = arith.constant 1.600000e+01 : f32
    %170 = vector.broadcast %cst_39 : f32 to vector<16x1xf32>
    %171 = arith.divf %169, %170 : vector<16x1xf32>
    %172 = vector.broadcast %171 : vector<16x1xf32> to vector<16x16xf32>
    %173 = arith.subf %167, %172 : vector<16x16xf32>
    %174 = arith.mulf %173, %173 : vector<16x16xf32>
    %cst_40 = arith.constant dense<0.000000e+00> : vector<16xf32>
    %175 = vector.multi_reduction <add>, %174, %cst_40 [1] : vector<16x16xf32> to vector<16xf32>
    %176 = vector.shape_cast %175 : vector<16xf32> to vector<16x1xf32>
    %cst_41 = arith.constant 1.600000e+01 : f32
    %177 = vector.broadcast %cst_41 : f32 to vector<16x1xf32>
    %178 = arith.divf %176, %177 : vector<16x1xf32>
    %179 = vector.broadcast %171 : vector<16x1xf32> to vector<16x16xf32>
    %180 = arith.subf %167, %179 : vector<16x16xf32>
    %cst_42 = arith.constant 9.99999974E-6 : f32
    %181 = vector.broadcast %cst_42 : f32 to vector<16x1xf32>
    %182 = arith.addf %178, %181 : vector<16x1xf32>
    %183 = math.rsqrt %182 : vector<16x1xf32>
    %184 = vector.broadcast %183 : vector<16x1xf32> to vector<16x16xf32>
    %185 = arith.mulf %180, %184 : vector<16x16xf32>
    %186 = vector.broadcast %6 : vector<1x16xf32> to vector<16x16xf32>
    %187 = arith.mulf %185, %186 : vector<16x16xf32>
    %188 = vector.broadcast %7 : vector<1x16xf32> to vector<16x16xf32>
    %189 = arith.addf %187, %188 : vector<16x16xf32>
    %cst_43 = arith.constant dense<0.000000e+00> : vector<16x16xf32>
    %190 = tpu.matmul %189, %12, %cst_43 {dimension_numbers = #tpu.dot_dimension_numbers<[1], [0], [0], [1], [0, 0, 1, 1], [], []>} : vector<16x16xf32>, vector<16x16xf32>, vector<16x16xf32> -> vector<16x16xf32>
    %191 = vector.broadcast %9 : vector<1x16xf32> to vector<16x16xf32>
    %192 = arith.addf %190, %191 : vector<16x16xf32>
    %cst_44 = arith.constant 0.000000e+00 : f32
    %193 = vector.broadcast %cst_44 : f32 to vector<16x16xf32>
    %194 = arith.maximumf %192, %193 : vector<16x16xf32>
    %cst_45 = arith.constant dense<0.000000e+00> : vector<16x16xf32>
    %195 = tpu.matmul %194, %13, %cst_45 {dimension_numbers = #tpu.dot_dimension_numbers<[1], [0], [0], [1], [0, 0, 1, 1], [], []>} : vector<16x16xf32>, vector<16x16xf32>, vector<16x16xf32> -> vector<16x16xf32>
    %196 = vector.broadcast %10 : vector<1x16xf32> to vector<16x16xf32>
    %197 = arith.addf %195, %196 : vector<16x16xf32>
    %198 = arith.addf %167, %197 : vector<16x16xf32>
    %199 = vector.shape_cast %198 : vector<16x16xf32> to vector<2x8x16xf32>
    %c0_46 = arith.constant 0 : index
    %c0_47 = arith.constant 0 : index
    %c0_48 = arith.constant 0 : index
    %200 = vector.load %arg4[%c0_46, %c0_47, %c0_48] : memref<2x8x16xf32, #tpu.memory_space<vmem>>, vector<2x8x16xf32>
    tpu.vector_store %arg4[%c0_46, %c0_47, %c0_48], %199 {strides = array<i32>} : memref<2x8x16xf32, #tpu.memory_space<vmem>>, vector<2x8x16xf32>,
    return
  }
}

</mosaic_0001>

<bundles_post_ra>
// kernel: tpu_custom_call.1
= control target key start
LH: loop header
LB: loop body
LE: loop exit
PB: predicated region body
PF: predicated region fallthrough
CT: control target
= control target key end

     0   :  { %9 = vsyncpa [#allocation3], 0  ;;  %s1451_s0 = inlined_call_operand.hbm [shape: f32[2,8,16], index: 0, kind: input, shape index: {}]   ;;  %s1452_s1 = inlined_call_operand.hbm [shape: f32[14,128], index: 1, kind: input, shape index: {}]   ;;  %s1453_s2 = inlined_call_operand.hbm [shape: f32[16,96], index: 2, kind: input, shape index: {}]   ;;  %s1454_s3 = inlined_call_operand.hbm [shape: f32[32,208], index: 3, kind: input, shape index: {}]   ;;  %s1455_s4 = inlined_call_operand.hbm [shape: f32[2,8,16], index: 4, kind: output, shape index: {}]  }
   0x1   :  { %10 = vsyncpa [#allocation6], 0 }
   0x2   :  { %11 = vsyncpa [#allocation9], 0 }
   0x3   :  { %12 = vsyncpa [#allocation4], 0  ;;  %s1208_s15 = smov [#allocation5]   ;;  %s1209_s17 = smov [#allocation2]  }
   0x4   :  { %s30_s16 = sshll.u32 %s1208_s15, 4  ;;  %s18_s18 = sshll.u32 %s1209_s17, 4  ;;  %s31_s16 = int_to_ptr.vmem [resolvable:$true] %s30_s16  ;;  %s1247_s18 = int_to_ptr.vmem [resolvable:$true] %s18_s18 }
   0x5   :  { %s1090_s21 = scalar_lea.hbm %s1452_s1, 256 }
   0x6   :  { %p1091_p0 = scmp.ne.s32.totalorder %s1452_s1, %s1090_s21  ;;  %p1094_p1 = scmp.lt.u32.totalorder %s1090_s21, %s1452_s1 }
   0x8   :  { %p1096_p2 = pnand %p1094_p1, %p1091_p0 }
   0xa   :  { %1099 = shalt.err (!%p1096_p2)
}
   0xb   :  { %s1100_s26 = scalar_lea.vmem %s31_s16, 256  ;;  %p1105_p4 = scmp.lt.s32.totalorder %s31_s16, %s31_s16 }
   0xc   :  { %p1101_p3 = scmp.ne.s32.totalorder %s31_s16, %s1100_s26  ;;  %p1106_p5 = scmp.lt.s32.totalorder %s1100_s26, %s1100_s26 }
   0xe   :  { %p1107_p6 = por %p1106_p5, %p1105_p4 }
  0x10   :  { %p1108_p7 = pnand %p1107_p6, %p1101_p3 }
  0x12   :  { %1111 = shalt.err (!%p1108_p7)
}
  0x13   :  { %s1210_s27 = smov 128   ;;  %s1211_s28 = smov 8  }
  0x14   :  { %36 = dma.hbm_to_vmem [thread:$0]  %s1452_s1, 256, %s31_s16, [#allocation6], %s1210_s27, %s1210_s27, %s1211_s28  }
  0x15   :  { %s1112_s7 = scalar_lea.hbm %s1451_s0, 256 }
  0x16   :  { %p1113_p8 = scmp.ne.s32.totalorder %s1451_s0, %s1112_s7  ;;  %p1116_p9 = scmp.lt.u32.totalorder %s1112_s7, %s1451_s0 }
  0x18   :  { %p1118_p10 = pnand %p1116_p9, %p1113_p8 }
  0x1a   :  { %1121 = shalt.err (!%p1118_p10)
}
  0x1b   :  { %s1122_s12 = scalar_lea.vmem %s1247_s18, 256  ;;  %p1127_p12 = scmp.lt.s32.totalorder %s1247_s18, %s1247_s18 }
  0x1c   :  { %p1123_p11 = scmp.ne.s32.totalorder %s1247_s18, %s1122_s12  ;;  %p1128_p13 = scmp.lt.s32.totalorder %s1122_s12, %s1122_s12 }
  0x1e   :  { %p1129_p0 = por %p1128_p13, %p1127_p12 }
  0x20   :  { %p1130_p1 = pnand %p1129_p0, %p1123_p11 }
  0x22   :  { %1133 = shalt.err (!%p1130_p1)
}
  0x23   :  { %24 = dma.hbm_to_vmem [thread:$0]  %s1451_s0, 256, %s1247_s18, [#allocation3], %s1210_s27, %s1210_s27, %s1211_s28  }
  0x24   :  { %s1212_s14 = smov [#allocation7]   ;;  %s1213_s16 = smov [#allocation8]  }
  0x25   :  { %s42_s15 = sshll.u32 %s1212_s14, 4  ;;  %s54_s17 = sshll.u32 %s1213_s16, 4  ;;  %s43_s15 = int_to_ptr.vmem [resolvable:$true] %s42_s15  ;;  %s1284_s17 = int_to_ptr.vmem [resolvable:$true] %s54_s17 }
  0x26   :  { %s1134_s21 = scalar_lea.hbm %s1453_s2, 256 }
  0x27   :  { %p1135_p2 = scmp.ne.s32.totalorder %s1453_s2, %s1134_s21  ;;  %p1138_p3 = scmp.lt.u32.totalorder %s1134_s21, %s1453_s2 }
  0x29   :  { %p1140_p4 = pnand %p1138_p3, %p1135_p2 }
  0x2b   :  { %1143 = shalt.err (!%p1140_p4)
}
  0x2c   :  { %s1144_s0 = scalar_lea.vmem %s43_s15, 256  ;;  %p1149_p6 = scmp.lt.s32.totalorder %s43_s15, %s43_s15 }
  0x2d   :  { %p1145_p5 = scmp.ne.s32.totalorder %s43_s15, %s1144_s0  ;;  %p1150_p7 = scmp.lt.s32.totalorder %s1144_s0, %s1144_s0 }
  0x2f   :  { %p1151_p8 = por %p1150_p7, %p1149_p6 }
  0x31   :  { %p1152_p9 = pnand %p1151_p8, %p1145_p5 }
  0x33   :  { %1155 = shalt.err (!%p1152_p9)
}
  0x34   :  { %48 = dma.hbm_to_vmem [thread:$0]  %s1453_s2, 256, %s43_s15, [#allocation6], %s1210_s27, %s1210_s27, %s1211_s28  }
  0x35   :  { %s1156_s5 = scalar_lea.hbm %s1454_s3, 1024 }
  0x36   :  { %p1157_p10 = scmp.ne.s32.totalorder %s1454_s3, %s1156_s5  ;;  %p1160_p11 = scmp.lt.u32.totalorder %s1156_s5, %s1454_s3 }
  0x38   :  { %p1162_p12 = pnand %p1160_p11, %p1157_p10 }
  0x3a   :  { %1165 = shalt.err (!%p1162_p12)
}
  0x3b   :  { %s1166_s10 = scalar_lea.vmem %s1284_s17, 1024  ;;  %p1171_p0 = scmp.lt.s32.totalorder %s1284_s17, %s1284_s17 }
  0x3c   :  { %p1167_p13 = scmp.ne.s32.totalorder %s1284_s17, %s1166_s10  ;;  %p1172_p1 = scmp.lt.s32.totalorder %s1166_s10, %s1166_s10 }
  0x3e   :  { %p1173_p2 = por %p1172_p1, %p1171_p0 }
  0x40   :  { %p1174_p3 = pnand %p1173_p2, %p1167_p13 }
  0x42   :  { %1177 = shalt.err (!%p1174_p3)
}
  0x43   :  { %s1214_s2 = smov 256   ;;  %s1215_s11 = smov 16  }
  0x44   :  { %60 = dma.hbm_to_vmem [thread:$0]  %s1454_s3, 1024, %s1284_s17, [#allocation9], %s1214_s2, %s1214_s2, %s1215_s11  }
  0x45   :  { %1200 = dma.done.wait [#allocation3], 256  }
  0x46   :  { %1201 = vsyncadd [#allocation3], 4294967040 }
  0x47   :  { %1202 = dma.done.wait [#allocation6], 512  }
  0x48   :  { %1203 = vsyncadd [#allocation6], 4294966784 }
  0x49   :  { %1204 = dma.done.wait [#allocation9], 1024  }
  0x4a   :  { %1205 = vsyncadd [#allocation9], 4294966272  ;;  %vm96_vm0 = vcmask 130048   ;;  %v1318_v0 = vld [vmem:[#allocation2] sm:$0xff]  ;;  %v1320_v1 = vld [vmem:[#allocation2 + $0x8] sm:$0xff]  ;;  %v1216_v41 = vmov 0.0   ;;  %v226_v47 = vlaneseq }
  0x4b   :  { %v97_v2 = vsel %vm96_vm0, %v1318_v0, 0.0  ;;  %v100_v3 = vsel %vm96_vm0, %v1320_v1, 0.0  ;;  %v1330_v14 = vld [vmem:[#allocation7] sm:$0xff]  ;;  %v1332_v15 = vld [vmem:[#allocation7 + $0x8] sm:$0xff]  ;;  %v922_v24 = vld [vmem:[#allocation5] ss:$0 sm:$0xff]  ;;  %392 = vmatprep.mubr.f32.mxu1 %v1216_v41 }
  0x4c   :  { %98 = vadd.xlane.f32.xlu0 %v97_v2  ;;  %v992_v16 = vpack.c.bf16 %v1332_v15, %v1330_v14  ;;  %v923_v26 = vld [vmem:[#allocation5 + $0x1] ss:$0 sm:$0xff]  ;;  %v1338_v33 = vld [vmem:[#allocation8 + $0x8] sm:$0xff]  ;;  %v1340_v34 = vld [vmem:[#allocation8 + $0x18] sm:$0xff]  ;;  %v227_v48 = vshrl.u32 %v226_v47, 7  ;;  %vm223_vm1 = vcmask 1042432  }
  0x4d   :  { %v86_v35 = vld [vmem:[#allocation8] sm:$0xff]  ;;  %v1034_v36 = vpack.i.bf16 %v1340_v34, %v1338_v33  ;;  %v996_v37 = vpack.c.bf16 %v1340_v34, %v1338_v33  ;;  %v88_v38 = vld [vmem:[#allocation8 + $0x10] sm:$0xff]  ;;  %v1346_v39 = vld [vmem:[#allocation8 + $0x28] sm:$0xff]  ;;  %vm244_vm2 = vcmask 1046528   ;;  %vm267_vm3 = vcmask 1045504   ;;  %s1217_s3 = smov 64  }
  0x4e   :  { %993 = vmatprep.subr.bf16.mxu0 %v992_v16  ;;  %v1348_v40 = vld [vmem:[#allocation8 + $0x38] sm:$0xff]  ;;  %v998_v42 = vpack.c.bf16 %v88_v38, %v86_v35  ;;  %v90_v44 = vld [vmem:[#allocation8 + $0x20] sm:$0xff]  ;;  %v92_v45 = vld [vmem:[#allocation8 + $0x30] sm:$0xff]  ;;  %v234_v49 = vsub.s32 1, %v227_v48  ;;  %v257_v50 = vsub.s32 2, %v227_v48  ;;  %v280_v52 = vsub.s32 3, %v227_v48 }
  0x4f   :  { %995 = vmatpush3.bf16.msra.mxu0 %v992_v16  ;;  %v1000_v43 = vpack.c.bf16 %v1348_v40, %v1346_v39  ;;  %997 = vmatprep.subr.bf16.mxu1 %v996_v37  ;;  %v1002_v46 = vpack.c.bf16 %v92_v45, %v90_v44  ;;  %v81_v51 = vld [vmem:[#allocation5 + $0x8] sm:$0xf]  ;;  %v228_v53 = vsub.s32 0, %v227_v48  ;;  %vm290_vm4 = vcmask 1044480   ;;  %s1218_s13 = smov 32   ;;  %s1219_s14 = smov 96  }
  0x50   :  { %101 = vadd.xlane.f32.xlu0 %v100_v3  ;;  %999 = vmatpush1.bf16.msra.mxu1 %v998_v42  ;;  %v235_v54 = vrot.slane %v81_v51, %v234_v49  ;;  %v258_v55 = vrot.slane %v81_v51, %v257_v50  ;;  %v281_v58 = vrot.slane %v81_v51, %v280_v52  ;;  %vm321_vm5 = vcmask 261120   ;;  %s1220_s15 = smov 48   ;;  %s1221_s16 = smov [#allocation10]  }
  0x51   :  { %1001 = vmatprep.subr.bf16.mxu1 %v1000_v43  ;;  %v229_v60 = vrot.slane %v81_v51, %v228_v53  ;;  %v926_v43 = vld [vmem:[#allocation5 + $0x2] ss:$0 sm:$0xff]  ;;  %vm475_vm10 = vcmask 523264   ;;  %vm524_vm11 = vcmask 1040384   ;;  %vm526_vm12 = vcmask 1041408   ;;  %s908_s17 = sshll.u32 %s1221_s16, 4  ;;  %s909_s17 = int_to_ptr.vmem [resolvable:$true] %s908_s17 }
  0x52   :  { %vm529_vm13 = vcmask 1043456   ;;  %s1178_s19 = scalar_lea.vmem %s909_s17, 256  ;;  %p1183_p5 = scmp.lt.s32.totalorder %s909_s17, %s909_s17 }
  0x53   :  { %p1179_p4 = scmp.ne.s32.totalorder %s909_s17, %s1178_s19  ;;  %p1184_p6 = scmp.lt.s32.totalorder %s1178_s19, %s1178_s19 }
  0x54   :  { %1003 = vmatpush1.bf16.msra.mxu1 %v1002_v46 }
  0x55   :  { %p1185_p7 = por %p1184_p6, %p1183_p5 }
  0x57   :  { %p1186_p8 = pnand %p1185_p7, %p1179_p4 }
  0xd9   :  { %v99_v4 = vpop.xlane.xlu0 %98 }
  0xda   :  { %v104_v5 = vmul.f32 0.0625, %v99_v4 }
  0xdc   :  { %v106_v6 = vsub.f32 %v1318_v0, %v104_v5 }
  0xdd   :  { %v102_v7 = vpop.xlane.xlu0 %101 }
  0xde   :  { %v105_v8 = vmul.f32 0.0625, %v102_v7  ;;  %v108_v9 = vmul.f32 %v106_v6, %v106_v6 }
  0xe0   :  { %v107_v10 = vsub.f32 %v1320_v1, %v105_v8  ;;  %v110_v11 = vsel %vm96_vm0, %v108_v9, 0.0 }
  0xe1   :  { %111 = vadd.xlane.f32.xlu1 %v110_v11 }
  0xe2   :  { %v109_v12 = vmul.f32 %v107_v10, %v107_v10 }
  0xe4   :  { %v113_v13 = vsel %vm96_vm0, %v109_v12, 0.0 }
  0xe5   :  { %114 = vadd.xlane.f32.xlu1 %v113_v13 }
 0x16e   :  { %v112_v17 = vpop.xlane.xlu1 %111 }
 0x16f   :  { %v116_v18 = vmul.f32 0.0625, %v112_v17 }
 0x171   :  { %v118_v19 = vadd.f32 1e-05, %v116_v18 }
 0x172   :  { %v115_v20 = vpop.xlane.xlu1 %114 }
 0x173   :  { %1054 = vrsqrt.f32 %v118_v19  ;;  %v117_v21 = vmul.f32 0.0625, %v115_v20 }
 0x175   :  { %v119_v22 = vadd.f32 1e-05, %v117_v21 }
 0x177   :  { %1056 = vrsqrt.f32 %v119_v22 }
 0x17d   :  { %v1055_v23 = vpop.eup %1054 }
 0x17e   :  { %v122_v25 = vmul.f32 %v1055_v23, %v106_v6 }
 0x180   :  { %v128_v27 = vmul.f32 %v922_v24, %v122_v25 }
 0x181   :  { %v1057_v28 = vpop.eup %1056 }
 0x182   :  { %v123_v29 = vmul.f32 %v1057_v28, %v107_v10  ;;  %v134_v30 = vadd.f32 %v923_v26, %v128_v27 }
 0x184   :  { %v129_v31 = vmul.f32 %v922_v24, %v123_v29  ;;  %964 = vmatprep.mubr.msk.f32.mxu0 %vm96_vm0, %v134_v30 }
 0x186   :  { %v135_v32 = vadd.f32 %v923_v26, %v129_v31 }
 0x188   :  { %965 = vmatmul.mubr.msk.f32.vlgmr.msra.gmra.mrb[0].mxu0 %vm96_vm0, %v135_v32 }
 0x25b   :  { %v1353_v56 = vpop.f32.mrb[0].mxu0 }
 0x25c   :  { %v220_v57 = vrot.slane %v1353_v56, 5  ;;  %v1356_v59 = vpop.f32.mrb[1].mxu0 }
 0x25d   :  { %v219_v61 = vrot.slane %v1356_v59, 5 }
 0x25e   :  { %v225_v62 = vsel %vm223_vm1, 0.0, %v220_v57  ;;  %v239_v63 = vmul.f32 %v235_v54, %v220_v57  ;;  %v262_v2 = vmul.f32 %v258_v55, %v220_v57  ;;  %v285_v6 = vmul.f32 %v281_v58, %v220_v57 }
 0x25f   :  { %v238_v3 = vmul.f32 %v235_v54, %v225_v62  ;;  %v261_v4 = vmul.f32 %v258_v55, %v225_v62  ;;  %v231_v7 = vmul.f32 %v229_v60, %v225_v62  ;;  %v284_v9 = vmul.f32 %v281_v58, %v225_v62 }
 0x260   :  { %v249_v5 = vrot.slane %v239_v63, 1  ;;  %v224_v10 = vsel %vm223_vm1, 0.0, %v219_v61  ;;  %v272_v12 = vrot.slane %v262_v2, 2  ;;  %v237_v16 = vmul.f32 %v235_v54, %v219_v61 }
 0x261   :  { %v248_v8 = vrot.slane %v238_v3, 1  ;;  %v271_v11 = vrot.slane %v261_v4, 2  ;;  %v236_v13 = vmul.f32 %v235_v54, %v224_v10  ;;  %v259_v17 = vmul.f32 %v258_v55, %v224_v10  ;;  %v929_v3 = vld [vmem:[#allocation5 + $0x3] ss:$0 sm:$0xff] }
 0x262   :  { %v260_v18 = vmul.f32 %v258_v55, %v219_v61  ;;  %v282_v19 = vmul.f32 %v281_v58, %v224_v10  ;;  %v283_v20 = vmul.f32 %v281_v58, %v219_v61  ;;  %v295_v21 = vrot.slane %v285_v6, 3 }
 0x263   :  { %v245_v22 = vrot.slane %v236_v13, 1  ;;  %v246_v23 = vrot.slane %v237_v16, 1  ;;  %v250_v24 = vsel %vm244_vm2, %v248_v8, %v249_v5  ;;  %v294_v25 = vrot.slane %v284_v9, 3 }
 0x264   :  { %v230_v26 = vmul.f32 %v229_v60, %v224_v10  ;;  %v268_v27 = vrot.slane %v259_v17, 2  ;;  %v269_v28 = vrot.slane %v260_v18, 2  ;;  %v291_v29 = vrot.slane %v282_v19, 3 }
 0x265   :  { %v292_v30 = vrot.slane %v283_v20, 3  ;;  %v247_v31 = vsel %vm244_vm2, %v245_v22, %v246_v23  ;;  %v254_v32 = vadd.f32 %v250_v24, %v231_v7  ;;  %v273_v37 = vsel %vm267_vm3, %v271_v11, %v272_v12 }
 0x266   :  { %v253_v35 = vadd.f32 %v247_v31, %v230_v26  ;;  %v270_v38 = vsel %vm267_vm3, %v268_v27, %v269_v28  ;;  %v296_v45 = vsel %vm290_vm4, %v294_v25, %v295_v21  ;;  %v930_v27 = vld [vmem:[#allocation5 + $0x4] ss:$0 sm:$0xff] }
 0x267   :  { %v277_v42 = vadd.f32 %v273_v37, %v254_v32  ;;  %v293_v46 = vsel %vm290_vm4, %v291_v29, %v292_v30 }
 0x268   :  { %v276_v44 = vadd.f32 %v270_v38, %v253_v35 }
 0x269   :  { %v300_v47 = vadd.f32 %v296_v45, %v277_v42 }
 0x26a   :  { %v299_v48 = vadd.f32 %v293_v46, %v276_v44 }
 0x26b   :  { %v306_v49 = vadd.f32 %v926_v43, %v300_v47 }
 0x26c   :  { %v305_v50 = vadd.f32 %v926_v43, %v299_v48 }
 0x26d   :  { %v308_v51 = vsub.f32 0.0, %v306_v49 }
 0x26e   :  { %v307_v52 = vsub.f32 0.0, %v305_v50 }
 0x26f   :  { %v311_v53 = vmul.f32 1.442695, %v308_v51 }
 0x270   :  { %v309_v54 = vmul.f32 1.442695, %v307_v52 }
 0x271   :  { %1058 = vpow2.f32 %v311_v53 }
 0x272   :  { %1060 = vpow2.f32 %v309_v54 }
 0x27b   :  { %v1059_v55 = vpop.eup %1058 }
 0x27c   :  { %v1061_v57 = vpop.eup %1060  ;;  %v314_v60 = vadd.f32 1.0, %v1059_v55 }
 0x27d   :  { %v313_v58 = vadd.f32 1.0, %v1061_v57 }
 0x27f   :  { %1062 = vrcp.f32 %v313_v58 }
 0x280   :  { %1064 = vrcp.f32 %v314_v60 }
 0x289   :  { %v1063_v61 = vpop.eup %1062 }
 0x28a   :  { %v1367_v62 = vmul.f32 %v1063_v61, %v305_v50  ;;  %v1065_v63 = vpop.eup %1064 }
 0x28b   :  { %v1372_v2 = vmul.f32 %v1065_v63, %v306_v49 }
 0x28c   :  { %927 = vmatmul.mubr.msk.f32.vlgmr.msra.gmra.mrb[0].mxu1 %vm321_vm5, %v1367_v62 }
 0x28d   :  { %398 = vmatprep.mubr.f32.mxu1 %v1216_v41 }
 0x290   :  { %928 = vmatmul.mubr.msk.f32.gmra.mrb[2].mxu1 %vm321_vm5, %v1372_v2 }
 0x35f   :  { %v394_v4 = vpop.f32.mrb[0].mxu1 }
 0x360   :  { %v409_v5 = vadd.f32 %v929_v3, %v394_v4  ;;  %v1376_v6 = vpop.f32.mrb[1].mxu1 }
 0x362   :  { %v413_v7 = vmin.f32 %v409_v5, 20.0  ;;  %vm411_vm7 = vcmp.gt.f32.partialorder %v409_v5, 20.0 }
 0x363   :  { %v400_v8 = vpop.f32.mrb[2].mxu1 }
 0x364   :  { %v415_v9 = vmul.f32 1.442695, %v413_v7  ;;  %v410_v10 = vadd.f32 %v929_v3, %v400_v8  ;;  %465 = vrot.lane.b32.xlu1 %v400_v8, %s1217_s3  ;;  %v402_v11 = vpop.f32.mrb[3].mxu1 }
 0x366   :  { %1066 = vpow2.f32 %v415_v9  ;;  %v414_v41 = vmin.f32 %v410_v10, 20.0  ;;  %vm412_vm9 = vcmp.gt.f32.partialorder %v410_v10, 20.0 }
 0x368   :  { %v417_v12 = vmul.f32 1.442695, %v414_v41 }
 0x36a   :  { %1068 = vpow2.f32 %v417_v12 }
 0x370   :  { %v1067_v13 = vpop.eup %1066 }
 0x371   :  { %v419_v16 = vadd.f32 1.0, %v1067_v13  ;;  %v422_v19 = vmul.f32 -0.5, %v1067_v13  ;;  %v425_v22 = vand.u32 2147483647, %v1067_v13 }
 0x373   :  { %1070 = vlog2.f32 %v419_v16  ;;  %v423_v20 = vadd.f32 1.0, %v422_v19  ;;  %vm426_vm6 = vcmp.lt.f32.partialorder %v425_v22, 0.0004427343 }
 0x374   :  { %v1069_v17 = vpop.eup %1068 }
 0x375   :  { %v428_v18 = vadd.f32 1.0, %v1069_v17  ;;  %v431_v21 = vmul.f32 -0.5, %v1069_v17  ;;  %v424_v25 = vmul.f32 %v1067_v13, %v423_v20  ;;  %v434_v28 = vand.u32 2147483647, %v1069_v17 }
 0x377   :  { %1072 = vlog2.f32 %v428_v18  ;;  %v432_v26 = vadd.f32 1.0, %v431_v21  ;;  %vm435_vm8 = vcmp.lt.f32.partialorder %v434_v28, 0.0004427343 }
 0x379   :  { %v433_v38 = vmul.f32 %v1069_v17, %v432_v26 }
 0x37d   :  { %v1071_v23 = vpop.eup %1070 }
 0x37e   :  { %v421_v24 = vmul.f32 0.6931472, %v1071_v23 }
 0x380   :  { %v427_v29 = vsel %vm426_vm6, %v424_v25, %v421_v24 }
 0x381   :  { %v1073_v30 = vpop.eup %1072  ;;  %v437_v31 = vsel %vm411_vm7, %v409_v5, %v427_v29 }
 0x382   :  { %v443_v32 = vmul.f32 %v930_v27, %v437_v31  ;;  %v449_v35 = vmul.f32 %v437_v31, %v1367_v62  ;;  %v430_v37 = vmul.f32 0.6931472, %v1073_v30 }
 0x384   :  { %453 = vrot.lane.b32.xlu1 %v449_v35, %s1218_s13  ;;  %v436_v42 = vsel %vm435_vm8, %v433_v38, %v430_v37  ;;  %v445_v52 = vmul.f32 1.442695, %v443_v32 }
 0x385   :  { %v438_v43 = vsel %vm412_vm9, %v410_v10, %v436_v42 }
 0x386   :  { %v450_v44 = vmul.f32 %v438_v43, %v1372_v2  ;;  %v444_v45 = vmul.f32 %v930_v27, %v438_v43 }
 0x388   :  { %463 = vrot.lane.b32.xlu1 %v394_v4, %s1217_s3  ;;  %455 = vrot.lane.b32.xlu0 %v450_v44, %s1218_s13  ;;  %v447_v46 = vmul.f32 1.442695, %v444_v45 }
 0x38a   :  { %1074 = vpow2.f32 %v447_v46 }
 0x38b   :  { %1076 = vpow2.f32 %v445_v52 }
 0x394   :  { %v1075_v47 = vpop.eup %1074 }
 0x395   :  { %472 = vrot.lane.b32.xlu0 %v1075_v47, %s1217_s3  ;;  %v1077_v55 = vpop.eup %1076 }
 0x399   :  { %483 = vrot.lane.b32.xlu0 %v402_v11, %s1217_s3  ;;  %v552_v11 = vsub.f32 0.0, %v1356_v59 }
 0x39b   :  { %v554_v13 = vmul.f32 1.442695, %v552_v11 }
 0x39d   :  { %1035 = vrot.lane.b32.xlu0 %v1034_v36, %s1217_s3  ;;  %1078 = vpow2.f32 %v554_v13  ;;  %v1044_v13 = vpack.i.bf16 %v1332_v15, %v1330_v14 }
 0x3a7   :  { %v1079_v23 = vpop.eup %1078 }
 0x3a8   :  { %v558_v25 = vadd.f32 1.0, %v1079_v23 }
 0x3aa   :  { %1080 = vrcp.f32 %v558_v25 }
 0x3d6   :  { %v466_v49 = vpop.permute.xlu1 %465 }
 0x3f6   :  { %v454_v53 = vpop.permute.xlu1 %453 }
 0x3f7   :  { %v459_v60 = vsel %vm321_vm5, %v449_v35, %v454_v53 }
 0x3fa   :  { %v456_v48 = vpop.permute.xlu0 %455  ;;  %v464_v57 = vpop.permute.xlu1 %463 }
 0x3fb   :  { %v460_v50 = vsel %vm321_vm5, %v450_v44, %v456_v48  ;;  %v469_v33 = vmul.f32 %v464_v57, %v459_v60 }
 0x3fc   :  { %v470_v51 = vmul.f32 %v466_v49, %v460_v50  ;;  %v1039_v49 = vpack.i.bf16 %v1348_v40, %v1346_v39  ;;  %v931_v39 = vld [vmem:[#allocation5 + $0x5] ss:$0 sm:$0xff] }
 0x3fe   :  { %478 = vrot.lane.b32.xlu1 %v470_v51, %s1217_s3  ;;  %v1081_v51 = vpop.eup %1080 }
 0x3ff   :  { %v564_v52 = vmul.f32 %v1081_v51, %v1356_v59  ;;  %v548_v59 = vmul.f32 %v931_v39, %v1367_v62 }
 0x407   :  { %v473_v54 = vpop.permute.xlu0 %472 }
 0x408   :  { %v476_v58 = vsel %vm475_vm10, %v1077_v55, %v473_v54 }
 0x409   :  { %v487_v34 = vmul.f32 0.0, %v476_v58 }
 0x40b   :  { %v484_v30 = vpop.permute.xlu0 %483 }
 0x40c   :  { %v486_v43 = vsel %vm475_vm10, %v1376_v6, %v484_v30  ;;  %v553_v6 = vsub.f32 0.0, %v1353_v56 }
 0x40e   :  { %v556_v53 = vmul.f32 1.442695, %v553_v6 }
 0x40f   :  { %v1036_v45 = vpop.permute.xlu0 %1035 }
 0x410   :  { %v1038_v47 = vunpack.i.h.bf16 %v1036_v45  ;;  %v1037_v48 = vunpack.i.l.bf16 %v1036_v45  ;;  %1082 = vpow2.f32 %v556_v53 }
 0x412   :  { %v1004_v50 = vpack.c.bf16 %v1038_v47, %v1037_v48 }
 0x414   :  { %1005 = vmatprep.subr.bf16.mxu0 %v1004_v50 }
 0x415   :  { %1007 = vmatpush3.bf16.msra.mxu0 %v1004_v50 }
 0x41a   :  { %v1083_v54 = vpop.eup %1082 }
 0x41b   :  { %v559_v55 = vadd.f32 1.0, %v1083_v54 }
 0x41d   :  { %1084 = vrcp.f32 %v559_v55 }
 0x427   :  { %v1085_v60 = vpop.eup %1084 }
 0x470   :  { %v479_v36 = vpop.permute.xlu1 %478 }
 0x471   :  { %v481_v61 = vsel %vm475_vm10, %v469_v33, %v479_v36  ;;  %v565_v33 = vmul.f32 %v1085_v60, %v1353_v56  ;;  %v939_v60 = vld [vmem:[#allocation5 + $0xd] ss:$0 sm:$0xff] }
 0x472   :  { %v488_v63 = vadd.f32 %v487_v34, %v481_v61 }
 0x474   :  { %v490_v3 = vrot.slane %v488_v63, 7 }
 0x476   :  { %v492_v4 = vmul.f32 %v490_v3, %v476_v58 }
 0x478   :  { %v493_v5 = vadd.f32 %v492_v4, %v481_v61 }
 0x47a   :  { %v495_v7 = vrot.slane %v493_v5, 7  ;;  %v525_v28 = vsel %vm524_vm11, %v488_v63, %v493_v5 }
 0x47c   :  { %v497_v8 = vmul.f32 %v495_v7, %v476_v58  ;;  %v549_v7 = vmul.f32 %v931_v39, %v1372_v2 }
 0x47e   :  { %v498_v9 = vadd.f32 %v497_v8, %v481_v61 }
 0x480   :  { %v500_v10 = vrot.slane %v498_v9, 7  ;;  %v527_v29 = vsel %vm526_vm12, %v525_v28, %v498_v9 }
 0x482   :  { %v502_v41 = vmul.f32 %v500_v10, %v476_v58 }
 0x484   :  { %v503_v12 = vadd.f32 %v502_v41, %v481_v61 }
 0x486   :  { %v505_v16 = vrot.slane %v503_v12, 7  ;;  %v528_v32 = vsel %vm223_vm1, %v527_v29, %v503_v12 }
 0x488   :  { %v507_v17 = vmul.f32 %v505_v16, %v476_v58 }
 0x48a   :  { %v508_v18 = vadd.f32 %v507_v17, %v481_v61 }
 0x48c   :  { %v510_v19 = vrot.slane %v508_v18, 7  ;;  %v530_v35 = vsel %vm529_vm13, %v528_v32, %v508_v18 }
 0x48e   :  { %v512_v20 = vmul.f32 %v510_v19, %v476_v58 }
 0x490   :  { %v513_v21 = vadd.f32 %v512_v20, %v481_v61 }
 0x492   :  { %v515_v22 = vrot.slane %v513_v21, 7  ;;  %v531_v38 = vsel %vm290_vm4, %v530_v35, %v513_v21 }
 0x494   :  { %v517_v24 = vmul.f32 %v515_v22, %v476_v58 }
 0x496   :  { %v518_v26 = vadd.f32 %v517_v24, %v481_v61 }
 0x498   :  { %v520_v27 = vrot.slane %v518_v26, 7  ;;  %v532_v42 = vsel %vm267_vm3, %v531_v38, %v518_v26 }
 0x49a   :  { %v522_v31 = vmul.f32 %v520_v27, %v476_v58 }
 0x49c   :  { %v523_v37 = vadd.f32 %v522_v31, %v481_v61 }
 0x49e   :  { %v533_v44 = vsel %vm244_vm2, %v532_v42, %v523_v37  ;;  %v934_v37 = vld [vmem:[#allocation5 + $0x6] ss:$0 sm:$0xff] }
 0x49f   :  { %v534_v46 = vmul.f32 %v533_v44, %v486_v43  ;;  %v935_v44 = vld [vmem:[#allocation5 + $0x7] ss:$0 sm:$0xff] }
 0x4a1   :  { %536 = vrot.lane.b32.xlu1 %v534_v46, %s1219_s14 }
 0x4a5   :  { %1040 = vrot.lane.b32.xlu1 %v1039_v49, %s1217_s3 }
 0x4a9   :  { %568 = vrot.lane.b32.xlu1 %v564_v52, %s1219_s14  ;;  %v936_v52 = vld [vmem:[#allocation5 + $0xc] ss:$0 sm:$0xff] }
 0x513   :  { %v537_v57 = vpop.permute.xlu1 %536 }
 0x514   :  { %v539_v58 = vadd.f32 %v537_v57, %v534_v46 }
 0x516   :  { %541 = vrot.lane.b32.xlu0 %v539_v58, %s1217_s3  ;;  %v550_v63 = vadd.f32 %v548_v59, %v539_v58 }
 0x517   :  { %v1041_v40 = vpop.permute.xlu1 %1040 }
 0x518   :  { %v1043_v34 = vunpack.i.h.bf16 %v1041_v40  ;;  %v1042_v36 = vunpack.i.l.bf16 %v1041_v40 }
 0x51a   :  { %v1008_v61 = vpack.c.bf16 %v1043_v34, %v1042_v36  ;;  %570 = vrot.lane.b32.xlu0 %v565_v33, %s1219_s14 }
 0x51b   :  { %v569_v3 = vpop.permute.xlu1 %568 }
 0x51c   :  { %v574_v4 = vmul.f32 %v569_v3, %v550_v63  ;;  %1009 = vmatprep.subr.bf16.mxu0 %v1008_v61 }
 0x51d   :  { %1011 = vmatpush3.bf16.msra.mxu0 %v1008_v61 }
 0x51e   :  { %975 = vmatprep.mubr.msk.f32.mxu0 %vm321_vm5, %v574_v4 }
 0x588   :  { %v542_v5 = vpop.permute.xlu0 %541 }
 0x589   :  { %v551_v8 = vadd.f32 %v549_v7, %v542_v5 }
 0x58c   :  { %v571_v9 = vpop.permute.xlu0 %570 }
 0x58d   :  { %v575_v10 = vmul.f32 %v571_v9, %v551_v8 }
 0x58f   :  { %976 = vmatmul.mubr.msk.f32.vlgmr.msra.gmra.mrb[2].mxu0 %vm321_vm5, %v575_v10 }
 0x662   :  { %v977_v56 = vpop.f32.mrb[2].mxu0 }
 0x663   :  { %v1412_v62 = vadd.f32 %v977_v56, %v1320_v1  ;;  %v664_v11 = vpop.f32.mrb[3].mxu0 }
 0x664   :  { %v1415_v41 = vadd.f32 %v664_v11, %v1318_v0 }
 0x665   :  { %v678_v12 = vsel %vm96_vm0, %v1412_v62, 0.0 }
 0x666   :  { %679 = vadd.xlane.f32.xlu0 %v678_v12  ;;  %v675_v2 = vsel %vm96_vm0, %v1415_v41, 0.0 }
 0x667   :  { %676 = vadd.xlane.f32.xlu1 %v675_v2 }
 0x678   :  { %1045 = vrot.lane.b32.xlu1 %v1044_v13, %s1217_s3 }
 0x6f3   :  { %v680_v16 = vpop.xlane.xlu0 %679 }
 0x6f4   :  { %v682_v1 = vmul.f32 0.0625, %v680_v16  ;;  %v677_v17 = vpop.xlane.xlu1 %676 }
 0x6f5   :  { %v681_v18 = vmul.f32 0.0625, %v677_v17 }
 0x6f6   :  { %v684_v0 = vsub.f32 %v1412_v62, %v682_v1 }
 0x6f7   :  { %v683_v19 = vsub.f32 %v1415_v41, %v681_v18 }
 0x6f8   :  { %v686_v22 = vmul.f32 %v684_v0, %v684_v0  ;;  %v1046_v24 = vpop.permute.xlu1 %1045 }
 0x6f9   :  { %v685_v20 = vmul.f32 %v683_v19, %v683_v19  ;;  %v1048_v14 = vunpack.i.h.bf16 %v1046_v24  ;;  %v1047_v15 = vunpack.i.l.bf16 %v1046_v24 }
 0x6fa   :  { %v690_v23 = vsel %vm96_vm0, %v686_v22, 0.0 }
 0x6fb   :  { %v687_v21 = vsel %vm96_vm0, %v685_v20, 0.0  ;;  %v1012_v25 = vpack.c.bf16 %v1048_v14, %v1047_v15 }
 0x6fc   :  { %688 = vadd.xlane.f32.xlu0 %v687_v21 }
 0x6fd   :  { %1013 = vmatprep.subr.bf16.mxu0 %v1012_v25 }
 0x6fe   :  { %1015 = vmatpush3.bf16.msra.mxu0 %v1012_v25 }
 0x700   :  { %691 = vadd.xlane.f32.xlu0 %v690_v23 }
 0x716   :  { %1050 = vrot.lane.b32.xlu0 %v1044_v13, %s1220_s15 }
 0x789   :  { %v689_v26 = vpop.xlane.xlu0 %688 }
 0x78a   :  { %v693_v27 = vmul.f32 0.0625, %v689_v26 }
 0x78c   :  { %v695_v28 = vadd.f32 1e-05, %v693_v27 }
 0x78d   :  { %v692_v29 = vpop.xlane.xlu0 %691 }
 0x78e   :  { %1086 = vrsqrt.f32 %v695_v28  ;;  %v694_v30 = vmul.f32 0.0625, %v692_v29 }
 0x790   :  { %v696_v31 = vadd.f32 1e-05, %v694_v30 }
 0x791   :  { %v1051_v32 = vpop.permute.xlu0 %1050 }
 0x792   :  { %1088 = vrsqrt.f32 %v696_v31  ;;  %v1053_v38 = vunpack.i.h.bf16 %v1051_v32  ;;  %v1052_v42 = vunpack.i.l.bf16 %v1051_v32 }
 0x794   :  { %v1016_v45 = vpack.c.bf16 %v1053_v38, %v1052_v42 }
 0x796   :  { %1017 = vmatprep.subr.bf16.mxu1 %v1016_v45 }
 0x797   :  { %1019 = vmatpush3.bf16.msra.mxu1 %v1016_v45 }
 0x798   :  { %v1087_v35 = vpop.eup %1086 }
 0x799   :  { %v699_v43 = vmul.f32 %v1087_v35, %v683_v19 }
 0x79b   :  { %v705_v46 = vmul.f32 %v934_v37, %v699_v43 }
 0x79c   :  { %v1089_v47 = vpop.eup %1088 }
 0x79d   :  { %v700_v48 = vmul.f32 %v1089_v47, %v684_v0  ;;  %v711_v49 = vadd.f32 %v935_v44, %v705_v46 }
 0x79f   :  { %v706_v50 = vmul.f32 %v934_v37, %v700_v48  ;;  %982 = vmatprep.mubr.msk.f32.mxu0 %vm96_vm0, %v711_v49 }
 0x7a1   :  { %v712_v51 = vadd.f32 %v935_v44, %v706_v50 }
 0x7a3   :  { %983 = vmatmul.mubr.msk.f32.vlgmr.msra.gmra.mrb[4].mxu0 %vm96_vm0, %v712_v51 }
 0x876   :  { %v984_v6 = vpop.f32.mrb[4].mxu0 }
 0x877   :  { %v803_v53 = vadd.f32 %v984_v6, %v936_v52  ;;  %v797_v54 = vpop.f32.mrb[5].mxu0 }
 0x878   :  { %v798_v55 = vadd.f32 %v936_v52, %v797_v54 }
 0x879   :  { %v807_v58 = vmax.f32 %v803_v53, 0.0 }
 0x87a   :  { %v806_v57 = vmax.f32 %v798_v55, 0.0 }
 0x87c   :  { %989 = vmatprep.mubr.msk.f32.mxu1 %vm96_vm0, %v806_v57 }
 0x87d   :  { %990 = vmatmul.mubr.msk.f32.vlgmr.msra.gmra.mrb[4].mxu1 %vm96_vm0, %v807_v58 }
 0x950   :  { %v991_v39 = vpop.f32.mrb[4].mxu1 }
 0x951   :  { %v896_v40 = vadd.f32 %v991_v39, %v939_v60  ;;  %v890_v33 = vpop.f32.mrb[5].mxu1 }
 0x952   :  { %v891_v34 = vadd.f32 %v939_v60, %v890_v33 }
 0x953   :  { %v900_v36 = vadd.f32 %v896_v40, %v1412_v62 }
 0x954   :  { %v899_v59 = vadd.f32 %v891_v34, %v1415_v41 }
 0x955   :  { %902 = vst.msk [vmem:[#allocation10 + $0x8] sm:$0xff] %vm96_vm0, %v900_v36 }
 0x956   :  { %901 = vst.msk [vmem:[#allocation10] sm:$0xff] %vm96_vm0, %v899_v59 }
 0x957   :  { %1189 = shalt.err (!%p1186_p8)
}
 0x958   :  { %s1190_s22 = scalar_lea.hbm %s1455_s4, 256 }
 0x959   :  { %p1191_p9 = scmp.ne.s32.totalorder %s1455_s4, %s1190_s22  ;;  %p1194_p10 = scmp.lt.u32.totalorder %s1190_s22, %s1455_s4 }
 0x95b   :  { %p1196_p11 = pnand %p1194_p10, %p1191_p9 }
 0x95d   :  { %1199 = shalt.err (!%p1196_p11)
}
 0x95e   :  { %914 = dma.vmem_to_hbm [thread:$0]  %s909_s17, 256, %s1455_s4, [#allocation4], %s1210_s27, %s1210_s27, %s1211_s28  }
 0x95f   :  { %1206 = dma.done.wait [#allocation4], 256  }
 0x960   :  { %1207 = vsyncadd [#allocation4], 4294967040 }
 0x961   :  { %918 = vsyncpa [#allocation3], 1 }
 0x962   :  { %919 = vsyncpa [#allocation6], 1 }
 0x963   :  { %920 = vsyncpa [#allocation9], 1 }
 0x964   :  { %921 = vsyncpa [#allocation4], 1 }

</bundles_post_ra>
